<compile_context>
chip_gen: v6e
topology: v6e:2x2x1
jax: 0.10.0
libtpu: 0.0.40
codegen_flags: <defaults>
</compile_context>

<pallas_src>
import math

import jax
import jax.numpy as jnp
from jax.experimental import pallas as pl
from jax.experimental.pallas import tpu as pltpu


def _locked_dropout_kernel(mask_ref, x_ref, o_ref):
    # mask_ref: (1, c_block) scaled keep-mask tile (broadcasts over rows).
    # x_ref / o_ref: (row_block, c_block) tile of the (rows, width) slab.
    o_ref[...] = x_ref[...] * mask_ref[...]


def _make_scaled_mask(key, bh, keep_prob, dtype):
    """Bernoulli(keep_prob) mask scaled by 1/keep_prob (inverted dropout)."""
    keep = jax.random.bernoulli(key, p=keep_prob, shape=(1, bh))
    # Scale in f32 for parity with the PyTorch reference, cast once to the
    # activation dtype so the kernel multiplies in native dtype.
    # TODO(synk): for fp8/int8 activations the cast-to-x.dtype mask no longer
    # matches PyTorch's float multiply semantics exactly.
    mask = keep.astype(jnp.float32) * jnp.float32(1.0 / keep_prob)
    return mask.astype(dtype)


def _vmem_budget():
    """(scoped-VMEM limit, per-tile byte budget), generation-aware."""
    try:
        cap = int(pltpu.get_tpu_info().vmem_capacity_bytes)
    except Exception:
        cap = 64 * 1024 * 1024  # conservative (v7x-sized) fallback
    # Leave headroom below physical capacity: ~96 MiB on v5e/v6e, 48 MiB on v7x.
    limit = min((cap * 3) // 4, 100 * 1024 * 1024)
    # ~6 live tiles: 2 double-buffered input + 2 output + mask + slack.
    return limit, limit // 6


def locked_dropout(x, seed, *, dropout_rate=0.5, training=True):
    """Locked / variational dropout. x: (T, B, H); a (B, H) mask shared over T."""
    if not training or not dropout_rate:
        return x
    if not (0.0 < float(dropout_rate) < 1.0):
        raise ValueError(f"dropout_rate must be in (0, 1), got {dropout_rate}")

    T, B, H = x.shape
    BH = B * H
    keep_prob = 1.0 - float(dropout_rate)

    key = jax.random.PRNGKey(seed)
    mask = _make_scaled_mask(key, BH, keep_prob, x.dtype)  # (1, BH)

    # ---- Layout: fold time steps into lanes so the last dim is a 128-multiple.
    fold = 1
    if BH % 128 != 0:
        need = 128 // math.gcd(BH, 128)
        if T % need == 0:
            fold = need
    rows_total = T // fold
    width = fold * BH
    x2d = x.reshape(rows_total, width)
    mask2d = jnp.tile(mask, (1, fold)) if fold > 1 else mask  # (1, width)

    # ---- Generation-aware tile sizing.
    itemsize = x2d.dtype.itemsize
    vmem_limit, tile_budget = _vmem_budget()
    sub_align = max(8, 32 // itemsize)  # 8 (f32) / 16 (bf16) / 32 (int8, fp8)
    bytes_per_row = width * itemsize
    MIN_GRID_STEPS = 4  # >= 2 per TensorCore on v7x, hides prologue/epilogue DMA

    if sub_align * bytes_per_row <= tile_budget:
        # Full-width column tile; tile over rows only.
        c_block = width
        fit_rows = tile_budget // bytes_per_row
        per_step = pl.cdiv(rows_total, MIN_GRID_STEPS)
        row_block = min(fit_rows, per_step, rows_total)
        if row_block < rows_total:
            row_block = max(sub_align, (row_block // sub_align) * sub_align)
            row_block = min(row_block, rows_total)
    else:
        # Even sub_align rows exceed the budget (very wide model): tile lanes too.
        row_block = min(sub_align, rows_total)
        lanes_fit = max(128, (tile_budget // (row_block * itemsize)) // 128 * 128)
        c_block = min(lanes_fit, width)

    grid = (pl.cdiv(rows_total, row_block), pl.cdiv(width, c_block))

    cost = pl.CostEstimate(
        flops=rows_total * width,
        transcendentals=0,
        bytes_accessed=(2 * rows_total * width + width) * itemsize,
    )

    out2d = pl.pallas_call(
        _locked_dropout_kernel,
        out_shape=jax.ShapeDtypeStruct((rows_total, width), x.dtype),
        grid_spec=pltpu.PrefetchScalarGridSpec(
            num_scalar_prefetch=0,
            grid=grid,
            in_specs=[
                pl.BlockSpec((1, c_block), lambda r, c: (0, c)),          # mask
                pl.BlockSpec((row_block, c_block), lambda r, c: (r, c)),  # x tile
            ],
            out_specs=pl.BlockSpec((row_block, c_block), lambda r, c: (r, c)),
        ),
        compiler_params=pltpu.CompilerParams(
            dimension_semantics=("parallel", "parallel"),  # shard tiles across TCs (v7x)
            vmem_limit_bytes=vmem_limit,
        ),
        cost_estimate=cost,
    )(mask2d, x2d)

    return out2d.reshape(T, B, H)


if __name__ == "__main__":
    key = jax.random.PRNGKey(0)
    T, B, H = 8, 2, 32
    x = jax.random.normal(key, (T, B, H), dtype=jnp.float32)

    p = 0.5
    seed = 1234
    out = jax.block_until_ready(
        locked_dropout(x, seed=seed, dropout_rate=p, training=True))

    # Reference: identical mask construction, applied with plain JAX broadcast.
    ref_mask = _make_scaled_mask(jax.random.PRNGKey(seed), B * H, 1.0 - p, x.dtype)
    expected = x * ref_mask.reshape(1, B, H)

    assert out.shape == x.shape
    assert bool(jnp.allclose(out, expected, rtol=1e-6, atol=1e-6)), \
        "kernel output mismatch vs reference mask * x"

    # Every output element is either 0 or x / (1 - p)  (inverted-dropout values).
    scaled = x / (1.0 - p)
    assert bool(jnp.all(
        jnp.isclose(out, 0.0, atol=1e-6) | jnp.isclose(out, scaled, rtol=1e-5)
    )), "output values not in {0, x/(1-p)}"

    # Mask is identical ("locked") across the sequence axis by construction.
    drop_pattern = jnp.isclose(out, 0.0, atol=1e-6)
    assert bool(jnp.all(drop_pattern == drop_pattern[0:1])), \
        "mask not shared across sequence axis"

    # Fallback path: odd width (no fold possible) + bf16 sublane packing.
    T2, B2, H2 = 6, 3, 10
    xb = jax.random.normal(jax.random.PRNGKey(2), (T2, B2, H2), dtype=jnp.bfloat16)
    out_b = jax.block_until_ready(
        locked_dropout(xb, seed=7, dropout_rate=0.25, training=True))
    ref_mask_b = _make_scaled_mask(jax.random.PRNGKey(7), B2 * H2, 0.75, xb.dtype)
    exp_b = xb * ref_mask_b.reshape(1, B2, H2)
    assert bool(jnp.allclose(out_b.astype(jnp.float32), exp_b.astype(jnp.float32),
                             rtol=2e-2, atol=2e-2)), "bf16 fallback mismatch"

    # Eval mode / p=0 path returns the input unchanged.
    assert jnp.array_equal(
        locked_dropout(x, seed=1, dropout_rate=p, training=False), x)
    assert jnp.array_equal(
        locked_dropout(x, seed=1, dropout_rate=0.0, training=True), x)

    print("KERNEL_OK")
</pallas_src>

<mosaic_0001>
module attributes {stable_mosaic.version = 11 : i64} {
  func.func @_locked_dropout_kernel(%arg0: i32, %arg1: i32, %arg2: memref<1x128xf32, #tpu.memory_space<vmem>>, %arg3: memref<4x128xf32, #tpu.memory_space<vmem>>, %arg4: memref<4x128xf32, #tpu.memory_space<vmem>>) attributes {dimension_semantics = [#tpu.dimension_semantics<parallel>, #tpu.dimension_semantics<parallel>], iteration_bounds = array<i64: 1, 1>, scalar_prefetch = 0 : i64, scratch_operands = 0 : i64, tpu.core_type = #tpu.core_type<tc>, window_params = [{transform_indices = @transform_0, window_bounds = array<i64: 1, 128>}, {transform_indices = @transform_1, window_bounds = array<i64: 4, 128>}, {transform_indices = @transform_2, window_bounds = array<i64: 4, 128>}]} {
    %c0 = arith.constant 0 : index
    %c0_0 = arith.constant 0 : index
    %0 = vector.load %arg3[%c0, %c0_0] : memref<4x128xf32, #tpu.memory_space<vmem>>, vector<4x128xf32>
    %c0_1 = arith.constant 0 : index
    %c0_2 = arith.constant 0 : index
    %1 = vector.load %arg2[%c0_1, %c0_2] : memref<1x128xf32, #tpu.memory_space<vmem>>, vector<1x128xf32>
    %2 = vector.broadcast %1 : vector<1x128xf32> to vector<4x128xf32>
    %3 = arith.mulf %0, %2 : vector<4x128xf32>
    %c0_3 = arith.constant 0 : index
    %c0_4 = arith.constant 0 : index
    %4 = vector.load %arg4[%c0_3, %c0_4] : memref<4x128xf32, #tpu.memory_space<vmem>>, vector<4x128xf32>
    tpu.vector_store %arg4[%c0_3, %c0_4], %3 {strides = array<i32>} : memref<4x128xf32, #tpu.memory_space<vmem>>, vector<4x128xf32>,
    return
  }
  func.func @transform_0(%arg0: i32, %arg1: i32) -> (i32, i32) {
    %c0_i32 = arith.constant 0 : i32
    %c0_i32_0 = arith.constant 0 : i32
    return %c0_i32, %arg1 : i32, i32
  }
  func.func @transform_1(%arg0: i32, %arg1: i32) -> (i32, i32) {
    %c0_i32 = arith.constant 0 : i32
    return %arg0, %arg1 : i32, i32
  }
  func.func @transform_2(%arg0: i32, %arg1: i32) -> (i32, i32) {
    %c0_i32 = arith.constant 0 : i32
    return %arg0, %arg1 : i32, i32
  }
}

</mosaic_0001>

<bundles_post_ra>
// kernel: tpu_custom_call.1
= control target key start
LH: loop header
LB: loop body
LE: loop exit
PB: predicated region body
PF: predicated region fallthrough
CT: control target
= control target key end

     0   :  { %7 = vsyncpa [#allocation3], 0  ;;  %s159_s0 = inlined_call_operand.hbm [shape: f32[1,128], index: 0, kind: input, shape index: {}]   ;;  %s160_s1 = inlined_call_operand.hbm [shape: f32[4,128], index: 1, kind: input, shape index: {}]   ;;  %s161_s2 = inlined_call_operand.hbm [shape: f32[4,128], index: 2, kind: output, shape index: {}]  }
   0x1   :  { %8 = vsyncpa [#allocation6], 0 }
   0x2   :  { %9 = vsyncpa [#allocation4], 0  ;;  %s132_s9 = smov [#allocation2]   ;;  %s133_s11 = smov [#allocation5]  }
   0x3   :  { %s16_s10 = sshll.u32 %s132_s9, 4  ;;  %s26_s12 = sshll.u32 %s133_s11, 4  ;;  %s17_s10 = int_to_ptr.vmem [resolvable:$true] %s16_s10  ;;  %s27_s12 = int_to_ptr.vmem [resolvable:$true] %s26_s12 }
   0x4   :  { %s74_s13 = scalar_lea.vmem %s17_s10, 16  ;;  %s78_s14 = scalar_lea.vmem %s17_s10, 32 }
   0x5   :  { %p75_p0 = scmp.ne.s32.totalorder %s17_s10, %s74_s13  ;;  %p79_p1 = scmp.lt.s32.totalorder %s17_s10, %s17_s10 }
   0x6   :  { %p80_p2 = scmp.lt.s32.totalorder %s78_s14, %s74_s13 }
   0x8   :  { %p81_p3 = por %p80_p2, %p79_p1 }
   0xa   :  { %p82_p4 = pnand %p81_p3, %p75_p0 }
   0xc   :  { %85 = shalt.err (!%p82_p4)
}
   0xd   :  { %19 = dma.hbm_to_vmem [thread:$0]  %s159_s0, 16, %s17_s10, [#allocation3]  }
   0xe   :  { %s94_s17 = scalar_lea.vmem %s27_s12, 64  ;;  %p99_p6 = scmp.lt.s32.totalorder %s27_s12, %s27_s12 }
   0xf   :  { %p95_p5 = scmp.ne.s32.totalorder %s27_s12, %s94_s17  ;;  %p100_p7 = scmp.lt.s32.totalorder %s94_s17, %s94_s17 }
  0x11   :  { %p101_p8 = por %p100_p7, %p99_p6 }
  0x13   :  { %p102_p9 = pnand %p101_p8, %p95_p5 }
  0x15   :  { %105 = shalt.err (!%p102_p9)
}
  0x16   :  { %29 = dma.hbm_to_vmem [thread:$0]  %s160_s1, 64, %s27_s12, [#allocation6]  }
  0x17   :  { %126 = dma.done.wait [#allocation3], 16  }
  0x18   :  { %127 = vsyncadd [#allocation3], 4294967280 }
  0x19   :  { %128 = dma.done.wait [#allocation6], 64  }
  0x1a   :  { %129 = vsyncadd [#allocation6], 4294967232  ;;  %s134_s20 = smov [#allocation7]   ;;  %v36_v0 = vld [vmem:[#allocation5] sm:$0xf] }
  0x1b   :  { %s52_s21 = sshll.u32 %s134_s20, 4  ;;  %v62_v1 = vld [vmem:[#allocation2] ss:$0 sm:$0xff]  ;;  %s53_s21 = int_to_ptr.vmem [resolvable:$true] %s52_s21 }
  0x1c   :  { %v44_v2 = vmul.f32 %v62_v1, %v36_v0  ;;  %s106_s0 = scalar_lea.vmem %s53_s21, 64  ;;  %p111_p11 = scmp.lt.s32.totalorder %s53_s21, %s53_s21 }
  0x1d   :  { %p107_p10 = scmp.ne.s32.totalorder %s53_s21, %s106_s0  ;;  %p112_p12 = scmp.lt.s32.totalorder %s106_s0, %s106_s0 }
  0x1e   :  { %45 = vst [vmem:[#allocation7] sm:$0xf] %v44_v2 }
  0x1f   :  { %p113_p13 = por %p112_p12, %p111_p11 }
  0x21   :  { %p114_p0 = pnand %p113_p13, %p107_p10 }
  0x23   :  { %117 = shalt.err (!%p114_p0)
}
  0x24   :  { %55 = dma.vmem_to_hbm [thread:$0]  %s53_s21, 64, %s161_s2, [#allocation4]  }
  0x25   :  { %130 = dma.done.wait [#allocation4], 64  }
  0x26   :  { %131 = vsyncadd [#allocation4], 4294967232 }
  0x27   :  { %59 = vsyncpa [#allocation3], 1 }
  0x28   :  { %60 = vsyncpa [#allocation6], 1 }
  0x29   :  { %61 = vsyncpa [#allocation4], 1 }

</bundles_post_ra>
